<compile_context>
chip_gen: v5e
topology: v5e:2x2
jax: 0.10.0
libtpu: 0.0.40
codegen_flags: <defaults>
</compile_context>

<pallas_src>
import functools

import jax
import jax.numpy as jnp
from jax import lax
from jax.experimental import pallas as pl
from jax.experimental.pallas import tpu as pltpu

MAX_LANE_TILE = 512                 # lane-dense tile width along L_out (>=128)
_VMEM_LIMIT = 32 * 1024 * 1024      # safe on v5e/v6e/v7x; blocks here are O(tile)


def _conv_tile(x_ref, w_ref, *, k_size, stride, tl):
    """Conv output (C_out, TL) f32 for the current (batch, L-tile) window.

    x_ref: (stride, C_in, W) phase-split window, W = tl + (k_size-1)//stride.
    w_ref: (k_size, C_out, C_in).
    K per-tap MXU matmuls accumulated in f32; every tap load is a contiguous
    lane slice of the Ref (no whole-row loads, no concat, no strided gathers).
    """
    acc = None
    for k in range(k_size):                      # static, small K
        r, q = k % stride, k // stride
        x_k = x_ref[r, :, pl.ds(q, tl)]          # (C_in, TL)
        p = jnp.dot(w_ref[k], x_k, preferred_element_type=jnp.float32)
        acc = p if acc is None else acc + p
    return acc


def _conv_stats_kernel(x_ref, w_ref, s1_ref, s2_ref, *,
                       k_size, stride, tl, rem, n_t):
    """Pass 1, grid (b, t): accumulate lane-wise sum / sum-of-squares of y."""
    t = pl.program_id(1)

    @pl.when(t == 0)
    def _init():
        s1_ref[...] = jnp.zeros_like(s1_ref)
        s2_ref[...] = jnp.zeros_like(s2_ref)

    y = _conv_tile(x_ref, w_ref, k_size=k_size, stride=stride, tl=tl)

    if rem == 0:                                 # static: no lane padding at all
        s1_ref[...] += y
        s2_ref[...] += y * y
    else:
        is_last = t == n_t - 1

        @pl.when(jnp.logical_not(is_last))       # full tiles: unmasked accumulate
        def _acc_full():
            s1_ref[...] += y
            s2_ref[...] += y * y

        @pl.when(is_last)                        # last tile: mask lane padding
        def _acc_masked():
            col = lax.broadcasted_iota(jnp.int32, y.shape, 1)
            ym = jnp.where(col < rem, y, 0.0)
            s1_ref[...] += ym
            s2_ref[...] += ym * ym


def _conv_bn_relu_kernel(x_ref, w_ref, scale_ref, shift_ref, o_ref, *,
                         k_size, stride, tl):
    """Pass 2, grid (b, t): recompute conv, apply y*scale + shift, ReLU."""
    y = _conv_tile(x_ref, w_ref, k_size=k_size, stride=stride, tl=tl)
    o_ref[...] = jnp.maximum(y * scale_ref[...] + shift_ref[...], 0.0
                             ).astype(o_ref.dtype)


def conv_block_forward(x, weight, bias, gamma, beta, *, stride, eps=1e-5,
                       mxu_dtype=jnp.float32):
    """x: (N, C_in, L); weight: (C_out, C_in, K) -- PyTorch Conv1d layout.

    `bias` is accepted for API parity but not applied: under training-mode
    BatchNorm the conv bias is subtracted back out by the batch mean.
    Use mxu_dtype=jnp.bfloat16 on v6e/v7x for production (halves x/w traffic,
    doubles MXU throughput); f32 default keeps the test bit-tight.
    """
    del bias
    n, c_in, l_in = x.shape
    c_out, _, k_size = weight.shape

    # Conv1dSamePadding: target l_out == l_in before computing the pad amount.
    padding = max((l_in - 1) * stride - l_in + k_size, 0)
    p_left = padding // 2                       # odd extra pad goes right
    l_pad = l_in + padding
    l_out = (l_pad - k_size) // stride + 1

    # Lane-dense tiling of L_out (128 <= TL <= 512, as large as useful).
    tl = min(MAX_LANE_TILE, -(-l_out // 128) * 128)
    n_t = -(-l_out // tl)
    rem = l_out % tl

    # Phase-split + per-tile windowed layout (halo tiling done wrapper-side so
    # kernel VMEM is O(tile) and every tap read is a contiguous lane slice):
    #   xw[b, t, r, c, m] = x_pad[b, c, (t*tl + m)*stride + r]
    q_max = (k_size - 1) // stride
    w_win = tl + q_max                          # window width incl. tap halo
    p_len = n_t * tl + q_max                    # phase-plane length
    l_x = p_len * stride                        # total padded input length
    x_p = jnp.pad(x.astype(mxu_dtype),
                  ((0, 0), (0, 0), (p_left, l_x - l_in - p_left)))
    xs = x_p.reshape(n, c_in, p_len, stride).transpose(0, 3, 1, 2)
    xw = jnp.stack([lax.slice_in_dim(xs, t * tl, t * tl + w_win, axis=3)
                    for t in range(n_t)], axis=1)     # (N, n_t, stride, C_in, W)

    # Per-tap weight: wk[k, o, c] = weight[o, c, k].
    wk = jnp.transpose(weight, (2, 0, 1)).astype(mxu_dtype)

    x_spec = pl.BlockSpec((None, None, stride, c_in, w_win),
                          lambda b, t: (b, t, 0, 0, 0))
    w_spec = pl.BlockSpec((k_size, c_out, c_in), lambda b, t: (0, 0, 0))

    stats_kernel = functools.partial(_conv_stats_kernel, k_size=k_size,
                                     stride=stride, tl=tl, rem=rem, n_t=n_t)
    s1, s2 = pl.pallas_call(
        stats_kernel,
        grid=(n, n_t),
        in_specs=[x_spec, w_spec],
        out_specs=(pl.BlockSpec((None, c_out, tl), lambda b, t: (b, 0, 0)),
                   pl.BlockSpec((None, c_out, tl), lambda b, t: (b, 0, 0))),
        out_shape=(jax.ShapeDtypeStruct((n, c_out, tl), jnp.float32),
                   jax.ShapeDtypeStruct((n, c_out, tl), jnp.float32)),
        compiler_params=pltpu.CompilerParams(
            dimension_semantics=("parallel", "arbitrary"),
            vmem_limit_bytes=_VMEM_LIMIT),
    )(xw, wk)

    # O(C_out) scalar glue: batch statistics -> per-channel scale/shift
    # (training-mode BatchNorm1d: biased batch variance, eps).
    count = n * l_out
    g32 = gamma.astype(jnp.float32)
    b32 = beta.astype(jnp.float32)
    mean = jnp.sum(s1, axis=(0, 2)) / count                     # (C_out,)
    var = jnp.sum(s2, axis=(0, 2)) / count - mean * mean
    inv = lax.rsqrt(var + eps)
    scale = (g32 * inv).reshape(c_out, 1)
    shift = (b32 - mean * g32 * inv).reshape(c_out, 1)

    apply_kernel = functools.partial(_conv_bn_relu_kernel, k_size=k_size,
                                     stride=stride, tl=tl)
    out = pl.pallas_call(
        apply_kernel,
        grid=(n, n_t),
        in_specs=[x_spec, w_spec,
                  pl.BlockSpec((c_out, 1), lambda b, t: (0, 0)),
                  pl.BlockSpec((c_out, 1), lambda b, t: (0, 0))],
        out_specs=pl.BlockSpec((None, c_out, tl), lambda b, t: (b, 0, t)),
        out_shape=jax.ShapeDtypeStruct((n, c_out, n_t * tl), jnp.float32),
        compiler_params=pltpu.CompilerParams(
            dimension_semantics=("parallel", "parallel"),
            vmem_limit_bytes=_VMEM_LIMIT),
    )(xw, wk, scale, shift)

    return out[:, :, :l_out]


def conv_block_ref(x, weight, bias, gamma, beta, *, stride, eps=1e-5):
    """Pure-JAX reference (mirrors the PyTorch forward, training-mode BN)."""
    k_size = weight.shape[2]
    l_in = x.shape[2]
    padding = max((l_in - 1) * stride - l_in + k_size, 0)
    p, extra = padding // 2, padding % 2
    x_pad = jnp.pad(x, ((0, 0), (0, 0), (p, p + extra)))
    y = lax.conv_general_dilated(x_pad, weight, (stride,), 'VALID',
                                 dimension_numbers=('NCH', 'OIH', 'NCH'))
    y = y + bias[None, :, None]
    mean = jnp.mean(y, axis=(0, 2), keepdims=True)
    var = jnp.mean((y - mean) ** 2, axis=(0, 2), keepdims=True)
    y = (y - mean) * lax.rsqrt(var + eps) * gamma[None, :, None] + beta[None, :, None]
    return jnp.maximum(y, 0.0)


if __name__ == "__main__":
    # ConvBlock(in_channels=4, out_channels=8, kernel_size=3, stride=s)
    # applied to x of shape (N=2, C_in=4, L=16); s=1 and s=2 are both checked.
    N, C_IN, L = 2, 4, 16
    C_OUT, K = 8, 3

    key = jax.random.PRNGKey(0)
    kx, kw, kb, kg, kbe = jax.random.split(key, 5)
    x = jax.random.normal(kx, (N, C_IN, L), dtype=jnp.float32)
    weight = 0.1 * jax.random.normal(kw, (C_OUT, C_IN, K), dtype=jnp.float32)
    bias = 0.1 * jax.random.normal(kb, (C_OUT,), dtype=jnp.float32)
    gamma = 1.0 + 0.1 * jax.random.normal(kg, (C_OUT,), dtype=jnp.float32)
    beta = 0.1 * jax.random.normal(kbe, (C_OUT,), dtype=jnp.float32)

    for stride in (1, 2):   # stride=2 exercises the phase-split tap path
        out = conv_block_forward(x, weight, bias, gamma, beta, stride=stride)
        out = jax.block_until_ready(out)
        ref = conv_block_ref(x, weight, bias, gamma, beta, stride=stride)
        assert out.shape == ref.shape, (out.shape, ref.shape)
        err = float(jnp.max(jnp.abs(out - ref)))
        assert err < 1e-4, (stride, err)

    print("KERNEL_OK")
</pallas_src>

<mosaic_0001>
module attributes {stable_mosaic.version = 11 : i64} {
  func.func @_conv_stats_kernel(%arg0: i32, %arg1: i32, %arg2: memref<1x1x1x4x130xf32, #tpu.memory_space<vmem>>, %arg3: memref<3x8x4xf32, #tpu.memory_space<vmem>>, %arg4: memref<1x8x128xf32, #tpu.memory_space<vmem>>, %arg5: memref<1x8x128xf32, #tpu.memory_space<vmem>>) attributes {dimension_semantics = [#tpu.dimension_semantics<parallel>, #tpu.dimension_semantics<arbitrary>], iteration_bounds = array<i64: 2, 1>, scalar_prefetch = 0 : i64, scratch_operands = 0 : i64, tpu.core_type = #tpu.core_type<tc>, window_params = [{transform_indices = @transform_0, window_bounds = array<i64: 1, 1, 1, 4, 130>}, {pipeline_mode = #tpu.pipeline_mode<synchronous>, transform_indices = @transform_1, window_bounds = array<i64: 3, 8, 4>}, {transform_indices = @transform_2, window_bounds = array<i64: 1, 8, 128>}, {transform_indices = @transform_3, window_bounds = array<i64: 1, 8, 128>}]} {
    %c0_i32 = arith.constant 0 : i32
    %0 = arith.cmpi eq, %arg1, %c0_i32 : i32
    %1 = arith.extui %0 : i1 to i32
    %c0_i32_0 = arith.constant 0 : i32
    %2 = arith.cmpi ne, %1, %c0_i32_0 : i32
    scf.if %2 {
      %cst_27 = arith.constant 0.000000e+00 : f32
      %26 = vector.broadcast %cst_27 : f32 to vector<8x128xf32>
      %c0_28 = arith.constant 0 : index
      %c0_29 = arith.constant 0 : index
      %c0_30 = arith.constant 0 : index
      %27 = vector.load %arg4[%c0_28, %c0_29, %c0_30] : memref<1x8x128xf32, #tpu.memory_space<vmem>>, vector<1x8x128xf32>
      %28 = vector.shape_cast %27 : vector<1x8x128xf32> to vector<8x128xf32>
      %29 = vector.shape_cast %26 : vector<8x128xf32> to vector<1x8x128xf32>
      tpu.vector_store %arg4[%c0_28, %c0_29, %c0_30], %29 {strides = array<i32>} : memref<1x8x128xf32, #tpu.memory_space<vmem>>, vector<1x8x128xf32>,
      %cst_31 = arith.constant 0.000000e+00 : f32
      %30 = vector.broadcast %cst_31 : f32 to vector<8x128xf32>
      %c0_32 = arith.constant 0 : index
      %c0_33 = arith.constant 0 : index
      %c0_34 = arith.constant 0 : index
      %31 = vector.load %arg5[%c0_32, %c0_33, %c0_34] : memref<1x8x128xf32, #tpu.memory_space<vmem>>, vector<1x8x128xf32>
      %32 = vector.shape_cast %31 : vector<1x8x128xf32> to vector<8x128xf32>
      %33 = vector.shape_cast %30 : vector<8x128xf32> to vector<1x8x128xf32>
      tpu.vector_store %arg5[%c0_32, %c0_33, %c0_34], %33 {strides = array<i32>} : memref<1x8x128xf32, #tpu.memory_space<vmem>>, vector<1x8x128xf32>,
    } else {
    }
    %c0 = arith.constant 0 : index
    %c0_1 = arith.constant 0 : index
    %c0_2 = arith.constant 0 : index
    %c0_3 = arith.constant 0 : index
    %c0_4 = arith.constant 0 : index
    %3 = vector.load %arg2[%c0, %c0_1, %c0_2, %c0_3, %c0_4] : memref<1x1x1x4x130xf32, #tpu.memory_space<vmem>>, vector<1x1x1x4x128xf32>
    %4 = vector.shape_cast %3 : vector<1x1x1x4x128xf32> to vector<4x128xf32>
    %c0_5 = arith.constant 0 : index
    %c0_6 = arith.constant 0 : index
    %c0_7 = arith.constant 0 : index
    %5 = vector.load %arg3[%c0_5, %c0_6, %c0_7] : memref<3x8x4xf32, #tpu.memory_space<vmem>>, vector<1x8x4xf32>
    %6 = vector.shape_cast %5 : vector<1x8x4xf32> to vector<8x4xf32>
    %cst = arith.constant dense<0.000000e+00> : vector<8x128xf32>
    %7 = tpu.matmul %6, %4, %cst {dimension_numbers = #tpu.dot_dimension_numbers<[1], [0], [0], [1], [0, 0, 1, 1], [], []>} : vector<8x4xf32>, vector<4x128xf32>, vector<8x128xf32> -> vector<8x128xf32>
    %c0_8 = arith.constant 0 : index
    %c0_9 = arith.constant 0 : index
    %c0_10 = arith.constant 0 : index
    %c0_11 = arith.constant 0 : index
    %c1 = arith.constant 1 : index
    %8 = vector.load %arg2[%c0_8, %c0_9, %c0_10, %c0_11, %c1] : memref<1x1x1x4x130xf32, #tpu.memory_space<vmem>>, vector<1x1x1x4x128xf32>
    %9 = vector.shape_cast %8 : vector<1x1x1x4x128xf32> to vector<4x128xf32>
    %c1_12 = arith.constant 1 : index
    %c0_13 = arith.constant 0 : index
    %c0_14 = arith.constant 0 : index
    %10 = vector.load %arg3[%c1_12, %c0_13, %c0_14] : memref<3x8x4xf32, #tpu.memory_space<vmem>>, vector<1x8x4xf32>
    %11 = vector.shape_cast %10 : vector<1x8x4xf32> to vector<8x4xf32>
    %cst_15 = arith.constant dense<0.000000e+00> : vector<8x128xf32>
    %12 = tpu.matmul %11, %9, %cst_15 {dimension_numbers = #tpu.dot_dimension_numbers<[1], [0], [0], [1], [0, 0, 1, 1], [], []>} : vector<8x4xf32>, vector<4x128xf32>, vector<8x128xf32> -> vector<8x128xf32>
    %13 = arith.addf %7, %12 : vector<8x128xf32>
    %c0_16 = arith.constant 0 : index
    %c0_17 = arith.constant 0 : index
    %c0_18 = arith.constant 0 : index
    %c0_19 = arith.constant 0 : index
    %c2 = arith.constant 2 : index
    %14 = vector.load %arg2[%c0_16, %c0_17, %c0_18, %c0_19, %c2] : memref<1x1x1x4x130xf32, #tpu.memory_space<vmem>>, vector<1x1x1x4x128xf32>
    %15 = vector.shape_cast %14 : vector<1x1x1x4x128xf32> to vector<4x128xf32>
    %c2_20 = arith.constant 2 : index
    %c0_21 = arith.constant 0 : index
    %c0_22 = arith.constant 0 : index
    %16 = vector.load %arg3[%c2_20, %c0_21, %c0_22] : memref<3x8x4xf32, #tpu.memory_space<vmem>>, vector<1x8x4xf32>
    %17 = vector.shape_cast %16 : vector<1x8x4xf32> to vector<8x4xf32>
    %cst_23 = arith.constant dense<0.000000e+00> : vector<8x128xf32>
    %18 = tpu.matmul %17, %15, %cst_23 {dimension_numbers = #tpu.dot_dimension_numbers<[1], [0], [0], [1], [0, 0, 1, 1], [], []>} : vector<8x4xf32>, vector<4x128xf32>, vector<8x128xf32> -> vector<8x128xf32>
    %19 = arith.addf %13, %18 : vector<8x128xf32>
    %c0_i32_24 = arith.constant 0 : i32
    %20 = arith.cmpi eq, %arg1, %c0_i32_24 : i32
    %true = arith.constant true
    %21 = arith.xori %20, %true : i1
    %22 = arith.extui %21 : i1 to i32
    %c0_i32_25 = arith.constant 0 : i32
    %23 = arith.cmpi ne, %22, %c0_i32_25 : i32
    scf.if %23 {
      %c0_27 = arith.constant 0 : index
      %c0_28 = arith.constant 0 : index
      %c0_29 = arith.constant 0 : index
      %26 = vector.load %arg4[%c0_27, %c0_28, %c0_29] : memref<1x8x128xf32, #tpu.memory_space<vmem>>, vector<1x8x128xf32>
      %27 = vector.shape_cast %26 : vector<1x8x128xf32> to vector<8x128xf32>
      %28 = arith.addf %27, %19 : vector<8x128xf32>
      %c0_30 = arith.constant 0 : index
      %c0_31 = arith.constant 0 : index
      %c0_32 = arith.constant 0 : index
      %29 = vector.load %arg4[%c0_30, %c0_31, %c0_32] : memref<1x8x128xf32, #tpu.memory_space<vmem>>, vector<1x8x128xf32>
      %30 = vector.shape_cast %29 : vector<1x8x128xf32> to vector<8x128xf32>
      %31 = vector.shape_cast %28 : vector<8x128xf32> to vector<1x8x128xf32>
      tpu.vector_store %arg4[%c0_30, %c0_31, %c0_32], %31 {strides = array<i32>} : memref<1x8x128xf32, #tpu.memory_space<vmem>>, vector<1x8x128xf32>,
      %c0_33 = arith.constant 0 : index
      %c0_34 = arith.constant 0 : index
      %c0_35 = arith.constant 0 : index
      %32 = vector.load %arg5[%c0_33, %c0_34, %c0_35] : memref<1x8x128xf32, #tpu.memory_space<vmem>>, vector<1x8x128xf32>
      %33 = vector.shape_cast %32 : vector<1x8x128xf32> to vector<8x128xf32>
      %34 = arith.mulf %19, %19 : vector<8x128xf32>
      %35 = arith.addf %33, %34 : vector<8x128xf32>
      %c0_36 = arith.constant 0 : index
      %c0_37 = arith.constant 0 : index
      %c0_38 = arith.constant 0 : index
      %36 = vector.load %arg5[%c0_36, %c0_37, %c0_38] : memref<1x8x128xf32, #tpu.memory_space<vmem>>, vector<1x8x128xf32>
      %37 = vector.shape_cast %36 : vector<1x8x128xf32> to vector<8x128xf32>
      %38 = vector.shape_cast %35 : vector<8x128xf32> to vector<1x8x128xf32>
      tpu.vector_store %arg5[%c0_36, %c0_37, %c0_38], %38 {strides = array<i32>} : memref<1x8x128xf32, #tpu.memory_space<vmem>>, vector<1x8x128xf32>,
    } else {
    }
    %24 = arith.extui %20 : i1 to i32
    %c0_i32_26 = arith.constant 0 : i32
    %25 = arith.cmpi ne, %24, %c0_i32_26 : i32
    scf.if %25 {
      %26 = tpu.iota {dimensions = array<i32: 1>} : vector<8x128xi32>
      %c16_i32 = arith.constant 16 : i32
      %27 = vector.broadcast %c16_i32 : i32 to vector<8x128xi32>
      %28 = arith.cmpi slt, %26, %27 : vector<8x128xi32>
      %cst_27 = arith.constant 0.000000e+00 : f32
      %29 = vector.broadcast %cst_27 : f32 to vector<8x128xf32>
      %30 = arith.select %28, %19, %29 : vector<8x128xi1>, vector<8x128xf32>
      %c0_28 = arith.constant 0 : index
      %c0_29 = arith.constant 0 : index
      %c0_30 = arith.constant 0 : index
      %31 = vector.load %arg4[%c0_28, %c0_29, %c0_30] : memref<1x8x128xf32, #tpu.memory_space<vmem>>, vector<1x8x128xf32>
      %32 = vector.shape_cast %31 : vector<1x8x128xf32> to vector<8x128xf32>
      %33 = arith.addf %32, %30 : vector<8x128xf32>
      %c0_31 = arith.constant 0 : index
      %c0_32 = arith.constant 0 : index
      %c0_33 = arith.constant 0 : index
      %34 = vector.load %arg4[%c0_31, %c0_32, %c0_33] : memref<1x8x128xf32, #tpu.memory_space<vmem>>, vector<1x8x128xf32>
      %35 = vector.shape_cast %34 : vector<1x8x128xf32> to vector<8x128xf32>
      %36 = vector.shape_cast %33 : vector<8x128xf32> to vector<1x8x128xf32>
      tpu.vector_store %arg4[%c0_31, %c0_32, %c0_33], %36 {strides = array<i32>} : memref<1x8x128xf32, #tpu.memory_space<vmem>>, vector<1x8x128xf32>,
      %c0_34 = arith.constant 0 : index
      %c0_35 = arith.constant 0 : index
      %c0_36 = arith.constant 0 : index
      %37 = vector.load %arg5[%c0_34, %c0_35, %c0_36] : memref<1x8x128xf32, #tpu.memory_space<vmem>>, vector<1x8x128xf32>
      %38 = vector.shape_cast %37 : vector<1x8x128xf32> to vector<8x128xf32>
      %39 = arith.mulf %30, %30 : vector<8x128xf32>
      %40 = arith.addf %38, %39 : vector<8x128xf32>
      %c0_37 = arith.constant 0 : index
      %c0_38 = arith.constant 0 : index
      %c0_39 = arith.constant 0 : index
      %41 = vector.load %arg5[%c0_37, %c0_38, %c0_39] : memref<1x8x128xf32, #tpu.memory_space<vmem>>, vector<1x8x128xf32>
      %42 = vector.shape_cast %41 : vector<1x8x128xf32> to vector<8x128xf32>
      %43 = vector.shape_cast %40 : vector<8x128xf32> to vector<1x8x128xf32>
      tpu.vector_store %arg5[%c0_37, %c0_38, %c0_39], %43 {strides = array<i32>} : memref<1x8x128xf32, #tpu.memory_space<vmem>>, vector<1x8x128xf32>,
    } else {
    }
    return
  }
  func.func @transform_0(%arg0: i32, %arg1: i32) -> (i32, i32, i32, i32, i32) {
    %c0_i32 = arith.constant 0 : i32
    %c0_i32_0 = arith.constant 0 : i32
    %c0_i32_1 = arith.constant 0 : i32
    %c0_i32_2 = arith.constant 0 : i32
    return %arg0, %arg1, %c0_i32, %c0_i32_0, %c0_i32_1 : i32, i32, i32, i32, i32
  }
  func.func @transform_1(%arg0: i32, %arg1: i32) -> (i32, i32, i32) {
    %c0_i32 = arith.constant 0 : i32
    %c0_i32_0 = arith.constant 0 : i32
    %c0_i32_1 = arith.constant 0 : i32
    %c0_i32_2 = arith.constant 0 : i32
    return %c0_i32, %c0_i32_0, %c0_i32_1 : i32, i32, i32
  }
  func.func @transform_2(%arg0: i32, %arg1: i32) -> (i32, i32, i32) {
    %c0_i32 = arith.constant 0 : i32
    %c0_i32_0 = arith.constant 0 : i32
    %c0_i32_1 = arith.constant 0 : i32
    return %arg0, %c0_i32, %c0_i32_0 : i32, i32, i32
  }
  func.func @transform_3(%arg0: i32, %arg1: i32) -> (i32, i32, i32) {
    %c0_i32 = arith.constant 0 : i32
    %c0_i32_0 = arith.constant 0 : i32
    %c0_i32_1 = arith.constant 0 : i32
    return %arg0, %c0_i32, %c0_i32_0 : i32, i32, i32
  }
}

</mosaic_0001>

<bundles_post_ra>
// kernel: tpu_custom_call.1
= control target key start
LH: loop header
LB: loop body
LE: loop exit
PB: predicated region body
PF: predicated region fallthrough
CT: control target
= control target key end

     0   :  { %9 = vsyncpa [#allocation3], 0  ;;  %s846_s0 = inlined_call_operand.vmem [shape: f32[2,1,1,4,130], index: 0, kind: input, shape index: {}]   ;;  %s847_s1 = inlined_call_operand.vmem [shape: f32[3,8,4], index: 1, kind: input, shape index: {}]   ;;  %s848_s2 = inlined_call_operand.hbm [shape: f32[2,8,128], index: 2, kind: output, shape index: {0}]   ;;  %s849_s3 = inlined_call_operand.hbm [shape: f32[2,8,128], index: 3, kind: output, shape index: {1}]  }
   0x1   :  { %11 = vsyncpa [#allocation3 + $0x1], 0 }
   0x2   :  { %12 = vsyncpa [#allocation5], 0 }
   0x3   :  { %14 = vsyncpa [#allocation5 + $0x1], 0  ;;  %s709_s12 = smov 0   ;;  %s711_s13 = smov 0  }
   0x4   :  { %s713_s14 = smov 0   ;;  %s715_s15 = smov 0  }
   0x5   :  { %s717_s16 = smov 0   ;;  %s719_s17 = smov 0  }
   0x6 LB: > { %s488_s18 = sadd.s32 4294967295, %s685_s17   ;;  %s489_s19 = sadd.s32 4294967294, %s685_s17   ;;  %s685_s17 = sphi %s719_s17, %s20_s17   ;;  %s681_s16 = sphi %s717_s16, %s856_s16   ;;  %s677_s15 = sphi %s715_s15, %s855_s15   ;;  %s673_s14 = sphi %s713_s14, %s854_s14   ;;  %s669_s13 = sphi %s711_s13, %s853_s13   ;;  %s665_s12 = sphi %s709_s12, %s852_s12  }
   0x7   : > { %s32_s20 = sadd.s32 1, %s681_s16  ;;  %s88_s21 = sadd.s32 1, %s673_s14 }
   0x8   : > { %p34_p0 = scmp.ge.s32.totalorder %s32_s20, 2  ;;  %p98_p1 = scmp.ne.s32.totalorder %s673_s14, %s669_s13 }
   0x9   : > { %p99_p2 = scmp.eq.s32.totalorder %s488_s18, 1  ;;  %p104_p3 = scmp.ne.s32.totalorder %s669_s13, %s665_s12 }
   0xa   : > { %s858_s20 = smov (%p34_p0, %s32_s20), 0  ;;  %p105_p5 = scmp.eq.s32.totalorder %s489_s19, 1 }
   0xb   : > { %p749_p4 = por %p99_p2, %p98_p1  ;;  %s85_s23 = ssub.s32 %s681_s16, %s858_s20 }
   0xc   : > { %p492_p6 = scmp.ge.s32.totalorder %s685_s17, 1  ;;  %p86_p7 = scmp.eq.s32.totalorder %s85_s23, 0 }
   0xd   : > { %p756_p8 = por %p105_p5, %p104_p3  ;;  %p164_p9 = scmp.lt.s32.totalorder %s685_s17, 3 }
   0xe   : > { %s762_s25 = scalar_select %p86_p7, %s673_s14, %s88_s21  }
   0xf   : > { %p165_p10 = pnand %p492_p6, %p164_p9 }
  0x10   : > { %p197_p11 = scmp.lt.s32.totalorder (!%p165_p10), %s677_s15, 1  ;;  %s687_s4 = smov (!%p165_p10), 127  }
  0x11   : > { %168 = sbr.rel (%p165_p10) target bundleno = 318 (0x13e), region = 28  ;;  %s688_s5 = smov (!%p165_p10), 126  }
  0x12   : > { %s785_s18 = sand.u32 (!%p165_p10), 1, %s669_s13   ;;  %s507_s21 = sshll.u32 (!%p165_p10), %s677_s15, 3 }
  0x13   : > { %s493_s19 = sshll.u32 (!%p165_p10), %s785_s18, 3  ;;  %s345_s9 = scalar_lea.sflag (!%p165_p10), [#allocation3], %s785_s18 }
  0x14   : > { %s595_s23 = scalar_lea.hbm (!%p165_p10), %s848_s2, 16 }
  0x16   : > { %s198_s26 = scalar_select %p197_p11, %s677_s15, 1  ;;  %vm231_vm0 = vcmask 1043456   ;;  %v213_v6 = vld [vmem:[%s847_s1] sm:$0xff]  ;;  %vm227_vm1 = vcmask 31744   ;;  %vm225_vm2 = vcmask 1039360   ;;  %v497_v10 = vld [vmem:[%s847_s1 + $0x8] sm:$0xff]  ;;  %v333_v15 = vlaneseq }
  0x17   : > { %vm291_vm3 = vcmask 1031168   ;;  %v502_v13 = vld [vmem:[%s847_s1 + $0x10] sm:$0xff]  ;;  %s196_s15 = scalar_lea.vmem [#allocation4], %s493_s19 }
  0x18   : > { %s511_s27 = sshll.u32 %s198_s26, 3  ;;  %v334_v18 = vand.u32 127, %v333_v15  ;;  %s376_s7 = sshll.u32 %s196_s15, 4  ;;  %s795_s7 = int_to_ptr.vmem [resolvable:$true] %s376_s7 }
  0x19   : > { %s205_s30 = scalar_lea.vmem %s846_s0, %s511_s27  ;;  %s360_s27 = scalar_lea.hbm %s848_s2, %s507_s21 }
  0x1a   : > { %v214_v0 = vld [vmem:[%s205_s30] sm:$0xff]  ;;  %vm335_vm4 = vcmp.lt.s32.totalorder %v334_v18, 16  ;;  %s364_s6 = sshll.u32 %s360_s27, 4  ;;  %s365_s6 = int_to_ptr.hbm [resolvable:$true] %s364_s6 }
  0x1b   : > { %218 = vst [vmem:[#allocation1] ss:$2 sm:$0xff] %v214_v0  ;;  %v212_v5 = vld [vmem:[%s205_s30] sm:$0xf]  ;;  %s374_s30 = scalar_lea.hbm %s849_s3, %s507_s21  ;;  %s589_s10 = sshra.s32 %s365_s6, 4  ;;  %s590_s10 = int_to_ptr.hbm [resolvable:$true] %s589_s10 }
  0x1c   : > { %500 = vmatpush.msk.msra.mxu1 %vm231_vm0, %v212_v5  ;;  %s378_s8 = sshll.u32 %s374_s30, 4  ;;  %s591_s11 = scalar_lea.hbm %s590_s10, 8  ;;  %s797_s8 = int_to_ptr.hbm [resolvable:$true] %s378_s8 }
  0x1d   : > { %501 = vmatmul.msk.f32.vlgmr.msra.gmra.mxu1 %vm227_vm1, %v213_v6  ;;  %p592_p12 = scmp.ne.s32.totalorder %s590_s10, %s591_s11  ;;  %p596_p1 = scmp.lt.s32.totalorder %s590_s10, %s848_s2 }
  0x1e   : > { %p597_p2 = scmp.lt.s32.totalorder %s595_s23, %s591_s11 }
  0x1f   : > { %p593_p13 = pnand %p592_p12, %p749_p4 }
  0x20   : > { %p598_p3 = por %p597_p2, %p596_p1 }
  0x21   : > { %p594_p0 = pneg %p593_p13 }
  0x22   : > { %v219_v1 = vld.sshfl [vmem:[#allocation1] sm:$0xff pattern:$0x75316420]  ;;  %v220_v2 = vld.sshfl [vmem:[#allocation1 + $0x8] sm:$0xff pattern:$0x75316420] }
  0x23   : > { %221 = vrot.lane.b32.xlu1 %v219_v1, %s687_s4  ;;  %284 = vst [vmem:[#allocation1] ss:$2 sm:$0xff] %v214_v0  ;;  %p599_p5 = pnand %p598_p3, %p594_p0 }
  0x2a   : > { %v285_v3 = vld.sshfl [vmem:[#allocation1] sm:$0xff pattern:$0x75316420]  ;;  %v286_v4 = vld.sshfl [vmem:[#allocation1 + $0x8] sm:$0xff pattern:$0x75316420] }
  0x2b   : > { %287 = vrot.lane.b32.xlu0 %v285_v3, %s688_s5  ;;  %223 = vrot.lane.b32.xlu1 %v220_v2, %s687_s4  ;;  %s189_s4 = scalar_lea.vmem [#allocation2], %s493_s19 }
  0x33   : > { %289 = vrot.lane.b32.xlu0 %v286_v4, %s688_s5  ;;  %s362_s5 = sshll.u32 %s189_s4, 4  ;;  %s363_s5 = int_to_ptr.vmem [resolvable:$true] %s362_s5 }
  0x95   : > { %v222_v7 = vpop.permute.xlu1 %221 }
  0x9a   : > { %v277_v17 = vpop.f32.mrf.mxu1 }
  0x9d   : > { %v288_v8 = vpop.permute.xlu0 %287  ;;  %v224_v9 = vpop.permute.xlu1 %223 }
  0x9e   : > { %v226_v11 = vsel %vm225_vm2, %v222_v7, %v224_v9 }
  0x9f   : > { %498 = vmatpush.msk.msra.mxu0 %vm231_vm0, %v226_v11 }
  0xa0   : > { %499 = vmatmul.msk.f32.vlgmr.msra.gmra.mxu0 %vm227_vm1, %v497_v10 }
  0xa5   : > { %v290_v12 = vpop.permute.xlu0 %289 }
  0xa6   : > { %v292_v14 = vsel %vm291_vm3, %v288_v8, %v290_v12 }
  0xa7   : > { %503 = vmatpush.msk.msra.mxu2 %vm231_vm0, %v292_v14 }
  0xa8   : > { %504 = vmatmul.msk.f32.vlgmr.msra.gmra.mxu2 %vm227_vm1, %v502_v13 }
 0x11d   : > { %v251_v16 = vpop.f32.mrf.mxu0 }
 0x11e   : > { %v278_v19 = vadd.f32 %v277_v17, %v251_v16 }
 0x12b   : > { %v315_v20 = vpop.f32.mrf.mxu2 }
 0x12c   : > { %v318_v21 = vadd.f32 %v315_v20, %v278_v19 }
 0x12e   : > { %v336_v22 = vsel %vm335_vm4, %v318_v21, 0.0 }
 0x12f   : > { %v341_v23 = vmul.f32 %v336_v22, %v336_v22  ;;  %339 = vst [vmem:[%s189_s4] sm:$0xff] %v336_v22 }
 0x130   : > { %602 = shalt.err (!%p599_p5)
}
 0x131   : > { %512 = dma.vmem_to_hbm [thread:$0]  (%p749_p4), %s363_s5, 128, %s365_s6, %s345_s9   ;;  %343 = vst [vmem:[%s196_s15] sm:$0xff] %v341_v23 }
 0x132   : > { %s350_s28 = scalar_lea.sflag [#allocation5], %s785_s18  ;;  %s617_s29 = sshra.s32 %s797_s8, 4  ;;  %s618_s29 = int_to_ptr.hbm [resolvable:$true] %s617_s29 }
 0x133   : > { %s619_s30 = scalar_lea.hbm %s618_s29, 8  ;;  %s623_s11 = scalar_lea.hbm %s849_s3, 16 }
 0x134   : > { %p620_p6 = scmp.ne.s32.totalorder %s618_s29, %s619_s30  ;;  %p624_p10 = scmp.lt.s32.totalorder %s618_s29, %s849_s3 }
 0x135   : > { %p625_p11 = scmp.lt.s32.totalorder %s623_s11, %s619_s30 }
 0x136   : > { %p621_p7 = pnand %p620_p6, %p749_p4 }
 0x137   : > { %p626_p12 = por %p625_p11, %p624_p10 }
 0x138   : > { %p622_p9 = pneg %p621_p7 }
 0x13a   : > { %p627_p13 = pnand %p626_p12, %p622_p9 }
 0x13c   : > { %630 = shalt.err (!%p627_p13)
}
 0x13d   : > { %513 = dma.vmem_to_hbm [thread:$0]  (%p749_p4), %s795_s7, 128, %s797_s8, %s350_s28  }
 0x13e PF: > { %p523_p0 = scmp.ge.s32.totalorder %s685_s17, 2  ;;  %s390_s18 = sand.u32 1, %s665_s12  }
 0x13f   : > { %s391_s5 = scalar_lea.sflag [#allocation3], %s390_s18 }
 0x140   : > { %p517_p1 = pnand %p523_p0, %p756_p8 }
 0x142   : > { %p518_p2 = pneg %p517_p1 }
 0x144   : > { %656 = dma.done.wait (%p518_p2), %s391_s5, 128  }
 0x145   : > { %658 = vsyncadd (%p518_p2), %s391_s5, 4294967168  ;;  %s401_s6 = scalar_lea.sflag [#allocation5], %s390_s18 }
 0x146   : > { %660 = dma.done.wait (%p518_p2), %s401_s6, 128  }
 0x147   : > { %662 = vsyncadd (%p518_p2), %s401_s6, 4294967168  ;;  %s20_s17 = sadd.s32 1, %s685_s17   ;;  %s852_s12 = smov %s669_s13 }
 0x148   : > { %p17_p3 = scmp.ge.s32.totalorder %s20_s17, 4   ;;  %s853_s13 = smov %s673_s14 }
 0x149   : > { %s854_s14 = smov %s762_s25  ;;  %s855_s15 = smov %s681_s16 }
 0x14a   : > { %s856_s16 = smov %s858_s20  ;;  %19 = sbr.rel (!%p17_p3) target bundleno = 6 (0x6), region = 94 }
 0x14f   :  { %407 = vsyncpa [#allocation3], 1 }
 0x150   :  { %409 = vsyncpa [#allocation3 + $0x1], 1 }
 0x151   :  { %410 = vsyncpa [#allocation5], 1 }
 0x152   :  { %412 = vsyncpa [#allocation5 + $0x1], 1 }

</bundles_post_ra>
